<compile_context>
chip_gen: v7x
topology: tpu7x:2x2x1
jax: 0.10.0
libtpu: 0.0.40
codegen_flags: <defaults>
</compile_context>

<pallas_src>
import functools

import jax
import jax.numpy as jnp
from jax.experimental import pallas as pl
from jax.experimental.pallas import tpu as pltpu


def _focal_kernel(x_ref, y_ref, alpha_ref, sum_ref, cnt_ref, sum_acc, cnt_acc,
                  *, gamma, ignore_index, n_c, s_last, ts, n_inner):
    ch = pl.program_id(1)
    s = pl.program_id(2)

    @pl.when(s == 0)
    def _():
        sum_acc[...] = jnp.zeros_like(sum_acc)
        cnt_acc[...] = jnp.zeros_like(cnt_acc)

    y = y_ref[0]                                  # (R, TS) int32 labels

    # Running max over the class slabs: plain element-wise VPU maxes on
    # vreg-dense (R, TS) slabs (no cross-sublane reduce in the hot path).
    m = x_ref[0, 0].astype(jnp.float32)
    for c in range(1, n_c):
        m = jnp.maximum(m, x_ref[0, c].astype(jnp.float32))

    # One pass over the classes: accumulate sum(exp(z)) and gather the label's
    # z / exp(z) / alpha with selects.  (No MXU one-hot gather: with tiny C it
    # would run at <4% MXU utilization.)
    # TODO(synk): the unrolled class loop assumes a modest class count.
    sum_exp = jnp.zeros(m.shape, jnp.float32)
    z_y = jnp.zeros(m.shape, jnp.float32)
    e_y = jnp.zeros(m.shape, jnp.float32)
    alpha_y = jnp.zeros(m.shape, jnp.float32)
    for c in range(n_c):
        z_c = x_ref[0, c].astype(jnp.float32) - m
        e_c = jnp.exp(z_c)
        sum_exp = sum_exp + e_c
        sel = y == c
        z_y = jnp.where(sel, z_c, z_y)
        e_y = jnp.where(sel, e_c, e_y)
        alpha_y = jnp.where(sel, alpha_ref[c], alpha_y)

    # Labels outside [0, C) that are not ignore_index would raise in PyTorch;
    # here they contribute zero loss but ARE counted in the 'mean' denominator.
    log_pt = z_y - jnp.log(sum_exp)               # gathered log_softmax
    # pt from the already-materialized exp(z): drops one full-width exp from
    # the single EUP slot; the approximate reciprocal is nearly free.
    pt = e_y * pl.reciprocal(sum_exp, approx=True)
    ce = -alpha_y * log_pt                        # NLLLoss(weight=alpha, 'none')
    one_m_pt = 1.0 - pt
    # Integer-gamma special cases avoid the exp/log pair of a float power.
    if gamma == 0.0:
        loss = ce
    elif gamma == 1.0:
        loss = one_m_pt * ce
    elif gamma == 2.0:
        loss = one_m_pt * one_m_pt * ce
    else:
        loss = (one_m_pt ** gamma) * ce

    valid = y != ignore_index
    if s_last % ts != 0:
        # Ragged last tile: mask out-of-range lanes instead of padding x in the
        # wrapper.  Keep this mask-after-compute ordering: the jnp.where below
        # squashes the Inf/NaN produced in the garbage lanes.
        col = jax.lax.broadcasted_iota(jnp.int32, y.shape, 1) + (ch * n_inner + s) * ts
        valid = jnp.logical_and(valid, col < s_last)

    # Per-tile lane reduction into tiny (R, 1) accumulators: the cross-lane
    # reduce rides the XLU slot (slack when mem-bound) and the VMEM saved vs.
    # lane-wide accumulators is spent on larger input tiles.
    # TODO(synk): sums/counts are f32 -> exactness is lost past ~2^24 valid
    # elements per (batch, chunk); widen the accumulator if that is expected.
    sum_acc[...] += jnp.sum(jnp.where(valid, loss, 0.0), axis=-1, keepdims=True)
    cnt_acc[...] += jnp.sum(valid.astype(jnp.float32), axis=-1, keepdims=True)

    @pl.when(s == pl.num_programs(2) - 1)
    def _():
        sum_ref[...] = jnp.sum(sum_acc[...]).reshape(1, 1, 1, 1)
        cnt_ref[...] = jnp.sum(cnt_acc[...]).reshape(1, 1, 1, 1)


def focal_loss(x, y, alpha=None, gamma=0.0, reduction='mean',
               ignore_index=-100, block_columns=1 << 18):
    """Pallas TPU implementation of FocalLoss.forward (reduction in {'mean','sum'})."""
    if reduction not in ('mean', 'sum', 'none'):
        raise ValueError('Reduction must be one of: "mean", "sum", "none".')
    if reduction == 'none':
        # TODO(synk): 'none' returns a dynamically-sized (filtered) vector in
        # PyTorch; no static-shape Pallas equivalent, only 'mean'/'sum' here.
        raise NotImplementedError("reduction='none' not supported in the Pallas port")

    if x.ndim > 2:
        n_b, n_c = x.shape[0], x.shape[1]
        s_total = 1
        for d in x.shape[2:]:
            s_total *= d
        x_src = x                                  # (N, C, *spatial), no copy
        y_src = y
    else:
        # (rows, C) input: classes are the trailing axis.
        # TODO(synk): this fallback materializes one small (rows,C)->(C,rows) transpose.
        n_b, n_c = 1, x.shape[1]
        s_total = x.shape[0]
        x_src = jnp.transpose(x)[None]             # (1, C, rows)
        y_src = y[None]

    # Sublane-split layout: trailing-dim reshape only (no HBM copy) when the
    # flattened spatial size divides by 8; otherwise single-row fallback.
    r = 8 if s_total % 8 == 0 else 1
    s_last = s_total // r
    x4 = x_src.reshape(n_b, n_c, r, s_last)        # original dtype, no upcast
    y4 = y_src.reshape(n_b, r, s_last).astype(jnp.int32)

    if alpha is None:
        alpha_vec = jnp.ones((n_c,), jnp.float32)
    else:
        alpha_vec = jnp.asarray(alpha, jnp.float32).reshape(n_c)

    # ---- generation-aware VMEM budget (v7x has only 64 MiB physical VMEM) ----
    try:
        phys_vmem = int(pltpu.get_tpu_info().vmem_capacity_bytes)
    except Exception:
        phys_vmem = 64 * 1024 * 1024
    if phys_vmem <= 64 * 1024 * 1024:
        vmem_limit = 48 * 1024 * 1024              # v7x
    else:
        vmem_limit = 80 * 1024 * 1024              # v5e / v6e (defaults are 16/32 MiB)
    budget = vmem_limit - 8 * 1024 * 1024          # headroom for compiler internals

    # Per-lane VMEM cost INCLUDING sublane padding: every (r, ts) slab costs
    # 32 B/lane (f32: 8x4; bf16: padded 8->16 sublanes x 2; r=1: padded 1->8),
    # inputs are double-buffered, and ~10 f32 temporaries live in the kernel.
    itemsize = int(jnp.dtype(x4.dtype).itemsize)
    x_lane_bytes = n_c * 8 * max(4, itemsize)
    y_lane_bytes = 32
    lane_bytes = 2 * (x_lane_bytes + y_lane_bytes) + 10 * 32
    ts_cap = max(128, budget // lane_bytes)

    # Spatial tile (in lanes): big enough that per-step DMA dwarfs the fixed
    # ~0.35us step overhead, capped by the padding-aware VMEM budget.
    ts = min(ts_cap, max(128, block_columns // r))
    if ts >= s_last:
        ts = s_last                                # full extent (any size OK)
    else:
        ts = max(128, (ts // 128) * 128)           # else must be a 128-multiple
    n_tiles = pl.cdiv(s_last, ts)

    # Spatial-chunk axis so both v7x TensorCores stay busy when batch is small/odd.
    if n_b % 2 == 1 and n_tiles >= 2 and n_tiles % 2 == 0:
        n_chunks = 2
    else:
        n_chunks = 1
    n_inner = n_tiles // n_chunks

    kernel = functools.partial(
        _focal_kernel, gamma=float(gamma), ignore_index=int(ignore_index),
        n_c=int(n_c), s_last=int(s_last), ts=int(ts), n_inner=int(n_inner))

    # TODO(synk): once measured with headroom, sweep pipeline_mode=pl.Buffered(3)
    # on the x/y specs (expected only a few %, costs 1.5x input VMEM).
    sum_out, cnt_out = pl.pallas_call(
        kernel,
        out_shape=(jax.ShapeDtypeStruct((n_b, n_chunks, 1, 1), jnp.float32),
                   jax.ShapeDtypeStruct((n_b, n_chunks, 1, 1), jnp.float32)),
        grid_spec=pltpu.PrefetchScalarGridSpec(
            num_scalar_prefetch=0,
            grid=(n_b, n_chunks, n_inner),
            in_specs=[
                pl.BlockSpec((1, n_c, r, ts),
                             lambda n, ch, s: (n, 0, 0, ch * n_inner + s)),
                pl.BlockSpec((1, r, ts),
                             lambda n, ch, s: (n, 0, ch * n_inner + s)),
                pl.BlockSpec(memory_space=pltpu.MemorySpace.SMEM),
            ],
            out_specs=[
                pl.BlockSpec((1, 1, 1, 1), lambda n, ch, s: (n, ch, 0, 0)),
                pl.BlockSpec((1, 1, 1, 1), lambda n, ch, s: (n, ch, 0, 0)),
            ],
            scratch_shapes=[
                pltpu.VMEM((r, 1), jnp.float32),
                pltpu.VMEM((r, 1), jnp.float32),
            ],
        ),
        compiler_params=pltpu.CompilerParams(
            dimension_semantics=("parallel", "parallel", "arbitrary"),
            vmem_limit_bytes=vmem_limit),
    )(x4, y4, alpha_vec)

    total = jnp.sum(sum_out)
    n_valid = jnp.sum(cnt_out)
    if reduction == 'mean':
        # len(y_valid) == 0  ->  torch.tensor(0.0)
        return jnp.where(n_valid > 0, total / jnp.maximum(n_valid, 1.0), 0.0)
    else:  # 'sum'
        return jnp.where(n_valid > 0, total, 0.0)


# ------------------------- pure-JAX reference -------------------------
def focal_loss_ref(x, y, alpha, gamma, ignore_index=-100):
    c = x.shape[1]
    xf = jnp.transpose(x, (0, 2, 3, 1)).reshape(-1, c).astype(jnp.float32)
    yf = y.reshape(-1)
    mask = yf != ignore_index
    log_p = jax.nn.log_softmax(xf, axis=-1)
    yc = jnp.clip(yf, 0, c - 1)
    log_pt = jnp.take_along_axis(log_p, yc[:, None], axis=-1)[:, 0]
    a = alpha[yc]
    ce = -a * log_pt
    pt = jnp.exp(log_pt)
    loss = jnp.where(mask, (1.0 - pt) ** gamma * ce, 0.0)
    n = jnp.sum(mask)
    return jnp.where(n > 0, jnp.sum(loss) / jnp.maximum(n, 1), 0.0)


if __name__ == "__main__":
    key = jax.random.PRNGKey(0)
    kx, ky = jax.random.split(key)

    N, C, H, W = 2, 4, 16, 16
    x = jax.random.normal(kx, (N, C, H, W), dtype=jnp.float32)
    y = jax.random.randint(ky, (N, H, W), 0, C, dtype=jnp.int32)
    # exercise ignore_index masking
    y = y.at[0, 0, :4].set(-100)

    # deterministic "parameters": per-class alpha weights, gamma
    alpha = jnp.linspace(0.25, 1.0, C).astype(jnp.float32)
    gamma = 2.0

    out = focal_loss(x, y, alpha=alpha, gamma=gamma, reduction='mean',
                     ignore_index=-100)
    out = jax.block_until_ready(out)

    ref = focal_loss_ref(x, y, alpha, gamma)
    # rtol accounts for the approximate-reciprocal pt path.
    assert jnp.allclose(out, ref, rtol=2e-3, atol=1e-6), (out, ref)

    print("KERNEL_OK")
</pallas_src>

<mosaic_0001>
module attributes {stable_mosaic.version = 11 : i64} {
  func.func @_focal_kernel(%arg0: i32, %arg1: i32, %arg2: i32, %arg3: memref<1x4x8x32xf32, #tpu.memory_space<vmem>>, %arg4: memref<1x8x32xi32, #tpu.memory_space<vmem>>, %arg5: memref<4xf32, #tpu.memory_space<smem>>, %arg6: memref<1x1x1x1xf32, #tpu.memory_space<vmem>>, %arg7: memref<1x1x1x1xf32, #tpu.memory_space<vmem>>, %arg8: memref<8x1xf32, #tpu.memory_space<vmem>>, %arg9: memref<8x1xf32, #tpu.memory_space<vmem>>) attributes {dimension_semantics = [#tpu.dimension_semantics<parallel>, #tpu.dimension_semantics<parallel>, #tpu.dimension_semantics<arbitrary>], iteration_bounds = array<i64: 2, 1, 1>, scalar_prefetch = 0 : i64, scratch_operands = 2 : i64, tpu.core_type = #tpu.core_type<tc>, window_params = [{transform_indices = @transform_0, window_bounds = array<i64: 1, 4, 8, 32>}, {transform_indices = @transform_1, window_bounds = array<i64: 1, 8, 32>}, {transform_indices = @transform_2, window_bounds = array<i64: 4>}, {transform_indices = @transform_3, window_bounds = array<i64: 1, 1, 1, 1>}, {transform_indices = @transform_4, window_bounds = array<i64: 1, 1, 1, 1>}]} {
    %c0_i32 = arith.constant 0 : i32
    %0 = arith.cmpi eq, %arg2, %c0_i32 : i32
    %1 = arith.extui %0 : i1 to i32
    %c0_i32_0 = arith.constant 0 : i32
    %2 = arith.cmpi ne, %1, %c0_i32_0 : i32
    scf.if %2 {
      %cst_55 = arith.constant 0.000000e+00 : f32
      %98 = vector.broadcast %cst_55 : f32 to vector<8x1xf32>
      %c0_56 = arith.constant 0 : index
      %c0_57 = arith.constant 0 : index
      %99 = vector.load %arg8[%c0_56, %c0_57] : memref<8x1xf32, #tpu.memory_space<vmem>>, vector<8x1xf32>
      tpu.vector_store %arg8[%c0_56, %c0_57], %98 {strides = array<i32>} : memref<8x1xf32, #tpu.memory_space<vmem>>, vector<8x1xf32>,
      %cst_58 = arith.constant 0.000000e+00 : f32
      %100 = vector.broadcast %cst_58 : f32 to vector<8x1xf32>
      %c0_59 = arith.constant 0 : index
      %c0_60 = arith.constant 0 : index
      %101 = vector.load %arg9[%c0_59, %c0_60] : memref<8x1xf32, #tpu.memory_space<vmem>>, vector<8x1xf32>
      tpu.vector_store %arg9[%c0_59, %c0_60], %100 {strides = array<i32>} : memref<8x1xf32, #tpu.memory_space<vmem>>, vector<8x1xf32>,
    } else {
    }
    %c0 = arith.constant 0 : index
    %c0_1 = arith.constant 0 : index
    %c0_2 = arith.constant 0 : index
    %3 = vector.load %arg4[%c0, %c0_1, %c0_2] : memref<1x8x32xi32, #tpu.memory_space<vmem>>, vector<1x8x32xi32>
    %4 = vector.shape_cast %3 : vector<1x8x32xi32> to vector<8x32xi32>
    %c0_3 = arith.constant 0 : index
    %c0_4 = arith.constant 0 : index
    %c0_5 = arith.constant 0 : index
    %c0_6 = arith.constant 0 : index
    %5 = vector.load %arg3[%c0_3, %c0_4, %c0_5, %c0_6] : memref<1x4x8x32xf32, #tpu.memory_space<vmem>>, vector<1x1x8x32xf32>
    %6 = vector.shape_cast %5 : vector<1x1x8x32xf32> to vector<8x32xf32>
    %c0_7 = arith.constant 0 : index
    %c1 = arith.constant 1 : index
    %c0_8 = arith.constant 0 : index
    %c0_9 = arith.constant 0 : index
    %7 = vector.load %arg3[%c0_7, %c1, %c0_8, %c0_9] : memref<1x4x8x32xf32, #tpu.memory_space<vmem>>, vector<1x1x8x32xf32>
    %8 = vector.shape_cast %7 : vector<1x1x8x32xf32> to vector<8x32xf32>
    %9 = arith.maximumf %6, %8 : vector<8x32xf32>
    %c0_10 = arith.constant 0 : index
    %c2 = arith.constant 2 : index
    %c0_11 = arith.constant 0 : index
    %c0_12 = arith.constant 0 : index
    %10 = vector.load %arg3[%c0_10, %c2, %c0_11, %c0_12] : memref<1x4x8x32xf32, #tpu.memory_space<vmem>>, vector<1x1x8x32xf32>
    %11 = vector.shape_cast %10 : vector<1x1x8x32xf32> to vector<8x32xf32>
    %12 = arith.maximumf %9, %11 : vector<8x32xf32>
    %c0_13 = arith.constant 0 : index
    %c3 = arith.constant 3 : index
    %c0_14 = arith.constant 0 : index
    %c0_15 = arith.constant 0 : index
    %13 = vector.load %arg3[%c0_13, %c3, %c0_14, %c0_15] : memref<1x4x8x32xf32, #tpu.memory_space<vmem>>, vector<1x1x8x32xf32>
    %14 = vector.shape_cast %13 : vector<1x1x8x32xf32> to vector<8x32xf32>
    %15 = arith.maximumf %12, %14 : vector<8x32xf32>
    %cst = arith.constant 0.000000e+00 : f32
    %16 = vector.broadcast %cst : f32 to vector<8x32xf32>
    %cst_16 = arith.constant 0.000000e+00 : f32
    %17 = vector.broadcast %cst_16 : f32 to vector<8x32xf32>
    %cst_17 = arith.constant 0.000000e+00 : f32
    %18 = vector.broadcast %cst_17 : f32 to vector<8x32xf32>
    %cst_18 = arith.constant 0.000000e+00 : f32
    %19 = vector.broadcast %cst_18 : f32 to vector<8x32xf32>
    %c0_19 = arith.constant 0 : index
    %c0_20 = arith.constant 0 : index
    %c0_21 = arith.constant 0 : index
    %c0_22 = arith.constant 0 : index
    %20 = vector.load %arg3[%c0_19, %c0_20, %c0_21, %c0_22] : memref<1x4x8x32xf32, #tpu.memory_space<vmem>>, vector<1x1x8x32xf32>
    %21 = vector.shape_cast %20 : vector<1x1x8x32xf32> to vector<8x32xf32>
    %22 = arith.subf %21, %15 : vector<8x32xf32>
    %23 = math.exp %22 : vector<8x32xf32>
    %24 = arith.addf %16, %23 : vector<8x32xf32>
    %c0_i32_23 = arith.constant 0 : i32
    %25 = vector.broadcast %c0_i32_23 : i32 to vector<8x32xi32>
    %26 = arith.cmpi eq, %4, %25 : vector<8x32xi32>
    %27 = arith.select %26, %22, %17 : vector<8x32xi1>, vector<8x32xf32>
    %28 = arith.select %26, %23, %18 : vector<8x32xi1>, vector<8x32xf32>
    %c0_24 = arith.constant 0 : index
    %29 = memref.load %arg5[%c0_24] : memref<4xf32, #tpu.memory_space<smem>>
    %30 = vector.broadcast %29 : f32 to vector<8x32xf32>
    %31 = arith.select %26, %30, %19 : vector<8x32xi1>, vector<8x32xf32>
    %c0_25 = arith.constant 0 : index
    %c1_26 = arith.constant 1 : index
    %c0_27 = arith.constant 0 : index
    %c0_28 = arith.constant 0 : index
    %32 = vector.load %arg3[%c0_25, %c1_26, %c0_27, %c0_28] : memref<1x4x8x32xf32, #tpu.memory_space<vmem>>, vector<1x1x8x32xf32>
    %33 = vector.shape_cast %32 : vector<1x1x8x32xf32> to vector<8x32xf32>
    %34 = arith.subf %33, %15 : vector<8x32xf32>
    %35 = math.exp %34 : vector<8x32xf32>
    %36 = arith.addf %24, %35 : vector<8x32xf32>
    %c1_i32 = arith.constant 1 : i32
    %37 = vector.broadcast %c1_i32 : i32 to vector<8x32xi32>
    %38 = arith.cmpi eq, %4, %37 : vector<8x32xi32>
    %39 = arith.select %38, %34, %27 : vector<8x32xi1>, vector<8x32xf32>
    %40 = arith.select %38, %35, %28 : vector<8x32xi1>, vector<8x32xf32>
    %c1_29 = arith.constant 1 : index
    %41 = memref.load %arg5[%c1_29] : memref<4xf32, #tpu.memory_space<smem>>
    %42 = vector.broadcast %41 : f32 to vector<8x32xf32>
    %43 = arith.select %38, %42, %31 : vector<8x32xi1>, vector<8x32xf32>
    %c0_30 = arith.constant 0 : index
    %c2_31 = arith.constant 2 : index
    %c0_32 = arith.constant 0 : index
    %c0_33 = arith.constant 0 : index
    %44 = vector.load %arg3[%c0_30, %c2_31, %c0_32, %c0_33] : memref<1x4x8x32xf32, #tpu.memory_space<vmem>>, vector<1x1x8x32xf32>
    %45 = vector.shape_cast %44 : vector<1x1x8x32xf32> to vector<8x32xf32>
    %46 = arith.subf %45, %15 : vector<8x32xf32>
    %47 = math.exp %46 : vector<8x32xf32>
    %48 = arith.addf %36, %47 : vector<8x32xf32>
    %c2_i32 = arith.constant 2 : i32
    %49 = vector.broadcast %c2_i32 : i32 to vector<8x32xi32>
    %50 = arith.cmpi eq, %4, %49 : vector<8x32xi32>
    %51 = arith.select %50, %46, %39 : vector<8x32xi1>, vector<8x32xf32>
    %52 = arith.select %50, %47, %40 : vector<8x32xi1>, vector<8x32xf32>
    %c2_34 = arith.constant 2 : index
    %53 = memref.load %arg5[%c2_34] : memref<4xf32, #tpu.memory_space<smem>>
    %54 = vector.broadcast %53 : f32 to vector<8x32xf32>
    %55 = arith.select %50, %54, %43 : vector<8x32xi1>, vector<8x32xf32>
    %c0_35 = arith.constant 0 : index
    %c3_36 = arith.constant 3 : index
    %c0_37 = arith.constant 0 : index
    %c0_38 = arith.constant 0 : index
    %56 = vector.load %arg3[%c0_35, %c3_36, %c0_37, %c0_38] : memref<1x4x8x32xf32, #tpu.memory_space<vmem>>, vector<1x1x8x32xf32>
    %57 = vector.shape_cast %56 : vector<1x1x8x32xf32> to vector<8x32xf32>
    %58 = arith.subf %57, %15 : vector<8x32xf32>
    %59 = math.exp %58 : vector<8x32xf32>
    %60 = arith.addf %48, %59 : vector<8x32xf32>
    %c3_i32 = arith.constant 3 : i32
    %61 = vector.broadcast %c3_i32 : i32 to vector<8x32xi32>
    %62 = arith.cmpi eq, %4, %61 : vector<8x32xi32>
    %63 = arith.select %62, %58, %51 : vector<8x32xi1>, vector<8x32xf32>
    %64 = arith.select %62, %59, %52 : vector<8x32xi1>, vector<8x32xf32>
    %c3_39 = arith.constant 3 : index
    %65 = memref.load %arg5[%c3_39] : memref<4xf32, #tpu.memory_space<smem>>
    %66 = vector.broadcast %65 : f32 to vector<8x32xf32>
    %67 = arith.select %62, %66, %55 : vector<8x32xi1>, vector<8x32xf32>
    %68 = math.log %60 : vector<8x32xf32>
    %69 = arith.subf %63, %68 : vector<8x32xf32>
    %70 = tpu.reciprocal %60 {approx = true} : vector<8x32xf32> -> vector<8x32xf32>
    %71 = arith.mulf %64, %70 : vector<8x32xf32>
    %cst_40 = arith.constant 0.000000e+00 : f32
    %72 = vector.broadcast %cst_40 : f32 to vector<8x32xf32>
    %73 = arith.subf %72, %67 : vector<8x32xf32>
    %74 = arith.mulf %73, %69 : vector<8x32xf32>
    %cst_41 = arith.constant 1.000000e+00 : f32
    %75 = vector.broadcast %cst_41 : f32 to vector<8x32xf32>
    %76 = arith.subf %75, %71 : vector<8x32xf32>
    %77 = arith.mulf %76, %76 : vector<8x32xf32>
    %78 = arith.mulf %77, %74 : vector<8x32xf32>
    %c-100_i32 = arith.constant -100 : i32
    %79 = vector.broadcast %c-100_i32 : i32 to vector<8x32xi32>
    %80 = arith.cmpi ne, %4, %79 : vector<8x32xi32>
    %c0_42 = arith.constant 0 : index
    %c0_43 = arith.constant 0 : index
    %81 = vector.load %arg8[%c0_42, %c0_43] : memref<8x1xf32, #tpu.memory_space<vmem>>, vector<8x1xf32>
    %cst_44 = arith.constant 0.000000e+00 : f32
    %82 = vector.broadcast %cst_44 : f32 to vector<8x32xf32>
    %83 = arith.select %80, %78, %82 : vector<8x32xi1>, vector<8x32xf32>
    %cst_45 = arith.constant dense<0.000000e+00> : vector<8xf32>
    %84 = vector.multi_reduction <add>, %83, %cst_45 [1] : vector<8x32xf32> to vector<8xf32>
    %85 = vector.shape_cast %84 : vector<8xf32> to vector<8x1xf32>
    %86 = arith.addf %81, %85 : vector<8x1xf32>
    %c0_46 = arith.constant 0 : index
    %c0_47 = arith.constant 0 : index
    %87 = vector.load %arg8[%c0_46, %c0_47] : memref<8x1xf32, #tpu.memory_space<vmem>>, vector<8x1xf32>
    tpu.vector_store %arg8[%c0_46, %c0_47], %86 {strides = array<i32>} : memref<8x1xf32, #tpu.memory_space<vmem>>, vector<8x1xf32>,
    %c0_48 = arith.constant 0 : index
    %c0_49 = arith.constant 0 : index
    %88 = vector.load %arg9[%c0_48, %c0_49] : memref<8x1xf32, #tpu.memory_space<vmem>>, vector<8x1xf32>
    %89 = arith.extui %80 : vector<8x32xi1> to vector<8x32xi32>
    %90 = arith.sitofp %89 : vector<8x32xi32> to vector<8x32xf32>
    %cst_50 = arith.constant dense<0.000000e+00> : vector<8xf32>
    %91 = vector.multi_reduction <add>, %90, %cst_50 [1] : vector<8x32xf32> to vector<8xf32>
    %92 = vector.shape_cast %91 : vector<8xf32> to vector<8x1xf32>
    %93 = arith.addf %88, %92 : vector<8x1xf32>
    %c0_51 = arith.constant 0 : index
    %c0_52 = arith.constant 0 : index
    %94 = vector.load %arg9[%c0_51, %c0_52] : memref<8x1xf32, #tpu.memory_space<vmem>>, vector<8x1xf32>
    tpu.vector_store %arg9[%c0_51, %c0_52], %93 {strides = array<i32>} : memref<8x1xf32, #tpu.memory_space<vmem>>, vector<8x1xf32>,
    %c0_i32_53 = arith.constant 0 : i32
    %95 = arith.cmpi eq, %arg2, %c0_i32_53 : i32
    %96 = arith.extui %95 : i1 to i32
    %c0_i32_54 = arith.constant 0 : i32
    %97 = arith.cmpi ne, %96, %c0_i32_54 : i32
    scf.if %97 {
      %c0_55 = arith.constant 0 : index
      %c0_56 = arith.constant 0 : index
      %98 = vector.load %arg8[%c0_55, %c0_56] : memref<8x1xf32, #tpu.memory_space<vmem>>, vector<8x1xf32>
      %99 = vector.shape_cast %98 : vector<8x1xf32> to vector<1x8x1xf32>
      %cst_57 = arith.constant dense<0.000000e+00> : vector<1xf32>
      %100 = vector.multi_reduction <add>, %99, %cst_57 [1, 2] : vector<1x8x1xf32> to vector<1xf32>
      %101 = vector.shape_cast %100 : vector<1xf32> to vector<1x1x1xf32>
      %102 = vector.extract %101[0, 0, 0] : f32 from vector<1x1x1xf32>
      %103 = vector.broadcast %102 : f32 to vector<1x1x1x1xf32>
      %c0_58 = arith.constant 0 : index
      %c0_59 = arith.constant 0 : index
      %c0_60 = arith.constant 0 : index
      %c0_61 = arith.constant 0 : index
      %104 = vector.load %arg6[%c0_58, %c0_59, %c0_60, %c0_61] : memref<1x1x1x1xf32, #tpu.memory_space<vmem>>, vector<1x1x1x1xf32>
      tpu.vector_store %arg6[%c0_58, %c0_59, %c0_60, %c0_61], %103 {strides = array<i32>} : memref<1x1x1x1xf32, #tpu.memory_space<vmem>>, vector<1x1x1x1xf32>,
      %c0_62 = arith.constant 0 : index
      %c0_63 = arith.constant 0 : index
      %105 = vector.load %arg9[%c0_62, %c0_63] : memref<8x1xf32, #tpu.memory_space<vmem>>, vector<8x1xf32>
      %106 = vector.shape_cast %105 : vector<8x1xf32> to vector<1x8x1xf32>
      %cst_64 = arith.constant dense<0.000000e+00> : vector<1xf32>
      %107 = vector.multi_reduction <add>, %106, %cst_64 [1, 2] : vector<1x8x1xf32> to vector<1xf32>
      %108 = vector.shape_cast %107 : vector<1xf32> to vector<1x1x1xf32>
      %109 = vector.extract %108[0, 0, 0] : f32 from vector<1x1x1xf32>
      %110 = vector.broadcast %109 : f32 to vector<1x1x1x1xf32>
      %c0_65 = arith.constant 0 : index
      %c0_66 = arith.constant 0 : index
      %c0_67 = arith.constant 0 : index
      %c0_68 = arith.constant 0 : index
      %111 = vector.load %arg7[%c0_65, %c0_66, %c0_67, %c0_68] : memref<1x1x1x1xf32, #tpu.memory_space<vmem>>, vector<1x1x1x1xf32>
      tpu.vector_store %arg7[%c0_65, %c0_66, %c0_67, %c0_68], %110 {strides = array<i32>} : memref<1x1x1x1xf32, #tpu.memory_space<vmem>>, vector<1x1x1x1xf32>,
    } else {
    }
    return
  }
  func.func @transform_0(%arg0: i32, %arg1: i32, %arg2: i32) -> (i32, i32, i32, i32) {
    %c1_i32 = arith.constant 1 : i32
    %0 = arith.muli %arg1, %c1_i32 : i32
    %1 = arith.addi %0, %arg2 : i32
    %c0_i32 = arith.constant 0 : i32
    %c0_i32_0 = arith.constant 0 : i32
    %c0_i32_1 = arith.constant 0 : i32
    return %arg0, %c0_i32, %c0_i32_0, %1 : i32, i32, i32, i32
  }
  func.func @transform_1(%arg0: i32, %arg1: i32, %arg2: i32) -> (i32, i32, i32) {
    %c1_i32 = arith.constant 1 : i32
    %0 = arith.muli %arg1, %c1_i32 : i32
    %1 = arith.addi %0, %arg2 : i32
    %c0_i32 = arith.constant 0 : i32
    %c0_i32_0 = arith.constant 0 : i32
    return %arg0, %c0_i32, %1 : i32, i32, i32
  }
  func.func @transform_2(%arg0: i32, %arg1: i32, %arg2: i32) -> i32 {
    %c0_i32 = arith.constant 0 : i32
    %c0_i32_0 = arith.constant 0 : i32
    return %c0_i32 : i32
  }
  func.func @transform_3(%arg0: i32, %arg1: i32, %arg2: i32) -> (i32, i32, i32, i32) {
    %c0_i32 = arith.constant 0 : i32
    %c0_i32_0 = arith.constant 0 : i32
    %c0_i32_1 = arith.constant 0 : i32
    return %arg0, %arg1, %c0_i32, %c0_i32_0 : i32, i32, i32, i32
  }
  func.func @transform_4(%arg0: i32, %arg1: i32, %arg2: i32) -> (i32, i32, i32, i32) {
    %c0_i32 = arith.constant 0 : i32
    %c0_i32_0 = arith.constant 0 : i32
    %c0_i32_1 = arith.constant 0 : i32
    return %arg0, %arg1, %c0_i32, %c0_i32_0 : i32, i32, i32, i32
  }
}

</mosaic_0001>

<bundles_post_ra>
// kernel: tpu_custom_call.1
= control target key start
LH: loop header
LB: loop body
LE: loop exit
PB: predicated region body
PF: predicated region fallthrough
CT: control target
= control target key end

     0   :  { %s1072_s0 = inlined_call_operand.hbm [shape: f32[2,4,8,32], index: 0, kind: input, shape index: {}]   ;;  %s1073_s1 = inlined_call_operand.hbm [shape: s32[2,8,32], index: 1, kind: input, shape index: {}]   ;;  %s1074_s2 = inlined_call_operand.vmem [shape: f32[4], index: 2, kind: input, shape index: {}]   ;;  %s1075_s3 = inlined_call_operand.vmem [shape: f32[2,1,1,1], index: 3, kind: output, shape index: {0}]   ;;  %s1076_s4 = inlined_call_operand.vmem [shape: f32[2,1,1,1], index: 4, kind: output, shape index: {1}]  }
   0x1   :  { %1081 = sst [smem:[#allocation13_spill]] %s1072_s0 }
   0x2   :  { %10 = vsyncpa [#allocation5], 0 }
   0x3   :  { %12 = vsyncpa [#allocation5 + $0x1], 0 }
   0x4   :  { %13 = vsyncpa [#allocation8], 0 }
   0x5   :  { %15 = vsyncpa [#allocation8 + $0x1], 0 }
   0x6   :  { %16 = vsyncpa [#allocation6], 0  ;;  %s874_s15 = smov 0   ;;  %s876_s16 = smov 0  }
   0x7   :  { %s878_s17 = smov 0   ;;  %s880_s18 = smov 0  }
   0x8   :  { %s882_s19 = smov 0   ;;  %s884_s20 = smov 0  }
   0x9 LB: > { %s594_s21 = sadd.s32 4294967295, %s841_s20   ;;  %s52_s22 = sadd.s32 1, %s829_s17  ;;  %s841_s20 = sphi %s884_s20, %s22_s20   ;;  %s837_s19 = sphi %s882_s19, %s1095_s19   ;;  %s833_s18 = sphi %s880_s18, %s1094_s18   ;;  %s829_s17 = sphi %s878_s17, %s1093_s17   ;;  %s825_s16 = sphi %s876_s16, %s1092_s16   ;;  %s821_s15 = sphi %s874_s15, %s1091_s15  }
   0xa   : > { %p59_p0 = scmp.ne.s32.totalorder %s829_s17, %s825_s16  ;;  %p60_p1 = scmp.eq.s32.totalorder %s841_s20, 0 }
   0xb   : > { %p65_p2 = scmp.ne.s32.totalorder %s825_s16, %s821_s15  ;;  %p908_p3 = scmp.eq.s32.totalorder %s594_s21, 0 }
   0xc   : > { %p61_p4 = por %p60_p1, %p59_p0  ;;  %p596_p5 = scmp.ge.s32.totalorder %s841_s20, 1 }
   0xd   : > { %s1082_s23 = scalar_select %p908_p3, 1, 0 }
   0xe   : > { %p915_p6 = por %p908_p3, %p65_p2  ;;  %p183_p7 = scmp.lt.s32.totalorder %s841_s20, 3 }
   0xf   : > { %s196_s27 = sshll.u32 %s1074_s2, 4  ;;  %p642_p10 = scmp.lt.s32.totalorder %s841_s20, 2  ;;  %s197_s27 = int_to_ptr.vmem [resolvable:$true] %s196_s27 }
  0x10   : > { %s1083_s24 = scalar_select %p915_p6, 1, 0 }
  0x11   : > { %p923_p8 = pnand %p596_p5, %p183_p7  ;;  %s931_s29 = sand.u32 1, %s829_s17  }
  0x12   : > { %p935_p12 = pnand %p642_p10, %p61_p4  ;;  %s708_s5 = scalar_lea.vmem %s197_s27, 16 }
  0x13   : > { %s1084_s28 = scalar_select %p923_p8, 1, 0 }
  0x14   : > { %p630_p9 = pneg %p923_p8  ;;  %p709_p13 = scmp.ne.s32.totalorder %s197_s27, %s708_s5 }
  0x15   : > { %p716_p5 = scmp.lt.s32.totalorder %s197_s27, %s197_s27  ;;  %p717_p7 = scmp.lt.s32.totalorder %s708_s5, %s708_s5 }
  0x16   : > { %p631_p11 = pnand %p630_p9, %p908_p3 }
  0x17   : > { %p718_p6 = por %p717_p7, %p716_p5 }
  0x18   : > { %p710_p0 = pneg %p631_p11 }
  0x1a   : > { %p711_p1 = pnand %p710_p0, %p709_p13 }
  0x1c   : > { %p712_p2 = pneg %p711_p1 }
  0x1e   : > { %p719_p8 = pnand %p718_p6, %p712_p2 }
  0x20   : > { %722 = shalt.err (!%p719_p8)
}
  0x21   : > { %s843_s6 = smov [#allocation9]   ;;  %s41_s7 = sadd.s32 1, %s837_s19 }
  0x22   : > { %633 = dma.vmem_to_smem (!%p631_p11), %s197_s27, 16, %s843_s6, [#allocation6]  }
  0x23   : > { %s599_s8 = sshll.u32 %s931_s29, 5  ;;  %p43_p4 = scmp.ge.s32.totalorder %s41_s7, 2 }
  0x24   : > { %s617_s9 = sshll.u32 %s837_s19, 9  ;;  %s211_s10 = scalar_lea.vmem [#allocation4], %s599_s8 }
  0x25   : > { %s220_s11 = sshll.u32 %s211_s10, 4  ;;  %s1097_s7 = smov (%p43_p4, %s41_s7), 0  ;;  %s949_s11 = int_to_ptr.vmem [resolvable:$true] %s220_s11 }
  0x26   : > { %s1086_s0 = sld [smem:[#allocation13_spill]]  ;;  %s47_s15 = ssub.s32 %s837_s19, %s1097_s7 }
  0x27   : > { %p953_p6 = scmp.eq.s32.totalorder %s47_s15, 0  ;;  %s208_s25 = scalar_lea.sflag [#allocation5], %s931_s29 }
  0x28   : > { %p725_p9 = pneg %p935_p12 }
  0x2c   : > { %s947_s14 = scalar_lea.hbm %s1086_s0, %s617_s9  ;;  %s728_s6 = scalar_lea.hbm %s1086_s0, 1024 }
  0x2d   : > { %s723_s26 = scalar_lea.hbm %s947_s14, 512  ;;  %p729_p13 = scmp.lt.u32.totalorder %s947_s14, %s1086_s0 }
  0x2e   : > { %p724_p8 = scmp.ne.s32.totalorder %s947_s14, %s723_s26  ;;  %p730_p0 = scmp.lt.u32.totalorder %s728_s6, %s723_s26 }
  0x2f   : > { %p732_p2 = scmp.lt.u32.totalorder %s723_s26, %s947_s14 }
  0x30   : > { %p726_p10 = pnand %p725_p9, %p724_p8  ;;  %p731_p1 = por %p730_p0, %p729_p13 }
  0x32   : > { %p727_p11 = pneg %p726_p10  ;;  %p733_p5 = por %p732_p2, %p731_p1 }
  0x34   : > { %p734_p7 = pnand %p733_p5, %p727_p11 }
  0x36   : > { %737 = shalt.err (!%p734_p7)
}
  0x37   : > { %s738_s10 = scalar_lea.vmem %s949_s11, 512  ;;  %s844_s12 = smov [#allocation4]  }
  0x38   : > { %p739_p4 = scmp.ne.s32.totalorder %s949_s11, %s738_s10  ;;  %s743_s13 = sshll.u32 %s844_s12, 4  ;;  %s744_s13 = int_to_ptr.vmem [resolvable:$false] %s743_s13 }
  0x39   : > { %s745_s15 = scalar_lea.vmem %s744_s13, 1024  ;;  %p746_p3 = scmp.lt.s32.totalorder %s949_s11, %s744_s13 }
  0x3a   : > { %p741_p8 = pnand %p739_p4, %p725_p9  ;;  %p747_p13 = scmp.lt.s32.totalorder %s745_s15, %s738_s10 }
  0x3c   : > { %p742_p10 = pneg %p741_p8  ;;  %p748_p0 = por %p747_p13, %p746_p3 }
  0x3e   : > { %p749_p1 = pnand %p748_p0, %p742_p10 }
  0x40   : > { %752 = shalt.err (!%p749_p1)
}
  0x41   : > { %s845_s26 = smov 128   ;;  %s846_s27 = smov 8  }
  0x42   : > { %637 = dma.hbm_to_vmem [thread:$0]  (!%p935_p12), %s947_s14, 512, %s949_s11, %s208_s25, %s845_s26, %s845_s26, %s846_s27  }
  0x43   : > { %s990_s5 = scalar_select %p953_p6, %s829_s17, %s52_s22  }
  0x44   : > { %s602_s6 = sshll.u32 %s931_s29, 3  ;;  %s603_s8 = sshll.u32 %s837_s19, 7 }
  0x45   : > { %s997_s12 = scalar_lea.hbm %s1073_s1, %s603_s8  ;;  %s234_s13 = scalar_lea.vmem [#allocation7], %s602_s6 }
  0x46   : > { %s243_s15 = sshll.u32 %s234_s13, 4  ;;  %s231_s0 = scalar_lea.sflag [#allocation8], %s931_s29  ;;  %s244_s15 = int_to_ptr.vmem [resolvable:$true] %s243_s15 }
  0x47   : > { %s753_s11 = scalar_lea.hbm %s997_s12, 128  ;;  %s758_s21 = scalar_lea.hbm %s1073_s1, 256 }
  0x48   : > { %p754_p3 = scmp.ne.s32.totalorder %s997_s12, %s753_s11  ;;  %p759_p2 = scmp.lt.u32.totalorder %s997_s12, %s1073_s1 }
  0x49   : > { %p760_p5 = scmp.lt.u32.totalorder %s758_s21, %s753_s11  ;;  %p762_p4 = scmp.lt.u32.totalorder %s753_s11, %s997_s12 }
  0x4a   : > { %p756_p6 = pnand %p754_p3, %p725_p9 }
  0x4b   : > { %p761_p7 = por %p760_p5, %p759_p2 }
  0x4c   : > { %p757_p11 = pneg %p756_p6 }
  0x4d   : > { %p763_p8 = por %p762_p4, %p761_p7 }
  0x4f   : > { %p764_p10 = pnand %p763_p8, %p757_p11 }
  0x51   : > { %767 = shalt.err (!%p764_p10)
}
  0x52   : > { %s768_s29 = scalar_lea.vmem %s244_s15, 128  ;;  %s847_s27 = smov [#allocation7]  }
  0x53   : > { %p769_p13 = scmp.ne.s32.totalorder %s244_s15, %s768_s29  ;;  %s773_s6 = sshll.u32 %s847_s27, 4  ;;  %s774_s6 = int_to_ptr.vmem [resolvable:$false] %s773_s6 }
  0x54   : > { %s775_s8 = scalar_lea.vmem %s774_s6, 256  ;;  %p776_p3 = scmp.lt.s32.totalorder %s244_s15, %s774_s6 }
  0x55   : > { %p771_p0 = pnand %p769_p13, %p725_p9  ;;  %p777_p6 = scmp.lt.s32.totalorder %s775_s8, %s768_s29 }
  0x57   : > { %p772_p1 = pneg %p771_p0  ;;  %p778_p2 = por %p777_p6, %p776_p3 }
  0x59   : > { %p779_p5 = pnand %p778_p2, %p772_p1 }
  0x5b   : > { %782 = shalt.err (!%p779_p5)
}
  0x5c   : > { %640 = dma.hbm_to_vmem [thread:$0]  (!%p935_p12), %s997_s12, 128, %s244_s15, %s231_s0  }
  0x5d   : > { %p1088_p11 = scmp.ne.s32.totalorder %s1084_s28, 0 }
  0x5e   : > { %s254_s9 = sand.u32 (!%p1088_p11), 1, %s825_s16   ;;  %p1089_p9 = scmp.ne.s32.totalorder (!%p1088_p11), %s1083_s24, 0 }
  0x5f   : > { %252 = sbr.rel (%p1088_p11) target bundleno = 525 (0x20d), region = 32  ;;  %s605_s10 = sshll.u32 (!%p1088_p11), %s254_s9, 5 }
  0x60   : > { %s255_s13 = scalar_lea.sflag (!%p1088_p11), [#allocation5], %s254_s9  ;;  %s258_s11 = scalar_lea.vmem (!%p1088_p11), [#allocation4], %s605_s10 }
  0x66   : > { %808 = dma.done.wait (%p1089_p9), %s255_s13, 512  }
  0x67   : > { %810 = vsyncadd (%p1089_p9), %s255_s13, 4294966784  ;;  %s606_s22 = sshll.u32 %s254_s9, 3  ;;  %s264_s14 = scalar_lea.sflag [#allocation8], %s254_s9 }
  0x68   : > { %s1026_s30 = scalar_lea.vmem [#allocation7], %s606_s22 }
  0x69   : > { %812 = dma.done.wait (%p1089_p9), %s264_s14, 128  }
  0x6a   : > { %814 = vsyncadd (%p1089_p9), %s264_s14, 4294967168  ;;  %p1090_p12 = scmp.ne.s32.totalorder %s1082_s23, 0 }
  0x6c   : > { %816 = dma.done.wait (%p1090_p12), [#allocation6], 16  }
  0x6d   : > { %818 = vsyncadd (%p1090_p12), [#allocation6], 4294967280 }
  0x6e   : > { %276 = sfence }
  0x6f   : > { %v331_v0 = vld [vmem:[%s258_s11] sm:$0xff]  ;;  %v608_v1 = vld [vmem:[%s258_s11 + $0x8] sm:$0xff]  ;;  %v609_v3 = vld [vmem:[%s258_s11 + $0x10] sm:$0xff]  ;;  %vm327_vm0 = vcmask 7168   ;;  %v848_v6 = vmov 0.0   ;;  %s348_s0 = sld [smem:[#allocation9]] }
  0x70   : > { %v334_v2 = vmax.f32 %v331_v0, %v608_v1  ;;  %v610_v4 = vld [vmem:[%s258_s11 + $0x18] sm:$0xff]  ;;  %328 = vst.msk [vmem:[#allocation2] sm:$0xff] %vm327_vm0, %v848_v6  ;;  %329 = vst.msk [vmem:[#allocation3] sm:$0xff] %vm327_vm0, %v848_v6  ;;  %s611_s23 = sld [smem:[#allocation9 + $0x1]]  ;;  %v330_v19 = vld [vmem:[%s1026_s30] sm:$0xff]  ;;  %s612_s24 = sld [smem:[#allocation9 + $0x2]] }
  0x71   : > { %vm345_vm1 = vcmp.eq.s32.totalorder %v330_v19, 0  ;;  %s613_s28 = sld [smem:[#allocation9 + $0x3]]  ;;  %vm355_vm2 = vcmp.eq.s32.totalorder %v330_v19, 1  ;;  %vm365_vm3 = vcmp.eq.s32.totalorder %v330_v19, 2  ;;  %vm375_vm4 = vcmp.eq.s32.totalorder %v330_v19, 3  ;;  %p311_p7 = scmp.lt.s32.totalorder %s833_s18, 1 }
  0x72   : > { %v337_v5 = vmax.f32 %v334_v2, %v609_v3  ;;  %vm391_vm5 = vcmp.ne.s32.totalorder %v330_v19, 4294967196  ;;  %vm394_vm6 = vcmask 261120   ;;  %vm424_vm7 = vcmask 0  }
  0x73   : > { %v614_v51 = vsel %vm391_vm5, 1.0, %v848_v6  ;;  %s1099_s18 = smov (!%p311_p7, %s833_s18), 1 }
  0x74   : > { %v340_v7 = vmax.f32 %v337_v5, %v610_v4  ;;  %v404_v53 = vsel %vm394_vm6, %v614_v51, 0.0  ;;  %s316_s21 = scalar_lea.vmem %s1075_s3, %s1099_s18  ;;  %s322_s27 = scalar_lea.vmem %s1076_s4, %s1099_s18 }
  0x75   : > { %v349_v22 = vstv %s348_s0 }
  0x76   : > { %v341_v8 = vsub.f32 %v331_v0, %v340_v7  ;;  %v351_v9 = vsub.f32 %v608_v1, %v340_v7  ;;  %v361_v10 = vsub.f32 %v609_v3, %v340_v7  ;;  %v371_v11 = vsub.f32 %v610_v4, %v340_v7 }
  0x77   : > { %v350_v25 = vsel %vm345_vm1, %v349_v22, 0.0  ;;  %v359_v26 = vstv %s611_s23  ;;  %v369_v30 = vstv %s612_s24  ;;  %v379_v34 = vstv %s613_s28  ;;  %v392_v54 = vld [vmem:[#allocation2] sm:$0xff]  ;;  %v401_v57 = vld [vmem:[#allocation3] sm:$0xff] }
  0x78   : > { %v342_v12 = vmul.f32 1.442695, %v341_v8  ;;  %v352_v13 = vmul.f32 1.442695, %v351_v9  ;;  %v362_v14 = vmul.f32 1.442695, %v361_v10  ;;  %v360_v29 = vsel %vm355_vm2, %v359_v26, %v350_v25 }
  0x79   : > { %v372_v15 = vmul.f32 1.442695, %v371_v11  ;;  %v346_v28 = vsel %vm345_vm1, %v341_v8, 0.0  ;;  %v370_v33 = vsel %vm365_vm3, %v369_v30, %v360_v29 }
  0x7a   : > { %696 = vpow2.f32 %v342_v12  ;;  %v356_v32 = vsel %vm355_vm2, %v351_v9, %v346_v28  ;;  %v380_v37 = vsel %vm375_vm4, %v379_v34, %v370_v33 }
  0x7b   : > { %698 = vpow2.f32 %v352_v13  ;;  %v366_v36 = vsel %vm365_vm3, %v361_v10, %v356_v32  ;;  %v386_v43 = vsub.f32 0.0, %v380_v37 }
  0x7c   : > { %700 = vpow2.f32 %v362_v14  ;;  %v376_v40 = vsel %vm375_vm4, %v371_v11, %v366_v36 }
  0x7d   : > { %702 = vpow2.f32 %v372_v15 }
  0x84   : > { %v697_v16 = vpop.eup %696 }
  0x85   : > { %v699_v17 = vpop.eup %698  ;;  %v347_v27 = vsel %vm345_vm1, %v697_v16, 0.0 }
  0x86   : > { %v701_v18 = vpop.eup %700  ;;  %v354_v20 = vadd.f32 %v699_v17, %v697_v16  ;;  %v357_v31 = vsel %vm355_vm2, %v699_v17, %v347_v27 }
  0x87   : > { %v703_v21 = vpop.eup %702  ;;  %v367_v35 = vsel %vm365_vm3, %v701_v18, %v357_v31 }
  0x88   : > { %v364_v23 = vadd.f32 %v701_v18, %v354_v20  ;;  %v377_v38 = vsel %vm375_vm4, %v703_v21, %v367_v35 }
  0x8a   : > { %v374_v24 = vadd.f32 %v703_v21, %v364_v23 }
  0x8c   : > { %704 = vlog2.f32 %v374_v24 }
  0x8d   : > { %706 = vrcp.f32 %v374_v24 }
  0x96   : > { %v705_v39 = vpop.eup %704 }
  0x97   : > { %v707_v41 = vpop.eup %706  ;;  %v382_v42 = vmul.f32 0.6931472, %v705_v39 }
  0x98   : > { %v385_v44 = vmul.f32 %v707_v41, %v377_v38 }
  0x99   : > { %v383_v45 = vsub.f32 %v376_v40, %v382_v42 }
  0x9a   : > { %v388_v46 = vsub.f32 1.0, %v385_v44 }
  0x9b   : > { %v387_v47 = vmul.f32 %v386_v43, %v383_v45 }
  0x9c   : > { %v389_v48 = vmul.f32 %v388_v46, %v388_v46 }
  0x9e   : > { %v390_v49 = vmul.f32 %v389_v48, %v387_v47 }
  0xa0   : > { %v393_v50 = vsel %vm391_vm5, %v390_v49, 0.0 }
  0xa1   : > { %v395_v52 = vsel %vm394_vm6, %v393_v50, 0.0 }
  0xa2   : > { %396 = vadd.xlane.f32.xlu0 %v395_v52 }
  0xa6   : > { %405 = vadd.xlane.f32.xlu0 %v404_v53 }
 0x12f   : > { %v397_v55 = vpop.xlane.xlu0 %396 }
 0x130   : > { %v398_v56 = vadd.f32 %v397_v55, %v392_v54 }
 0x132   : > { %400 = vst.msk [vmem:[#allocation2] sm:$0xff] %vm327_vm0, %v398_v56 }
 0x133   : > { %v406_v58 = vpop.xlane.xlu0 %405 }
 0x134   : > { %v407_v59 = vadd.f32 %v406_v58, %v401_v57 }
 0x136   : > { %408 = vst.msk [vmem:[#allocation3] sm:$0xff] %vm327_vm0, %v407_v59 }
 0x139   : > { %v412_v60 = vld [vmem:[#allocation2] sm:$0xff] }
 0x13a   : > { %v413_v61 = vsel %vm327_vm0, %v412_v60, 0.0 }
 0x13b   : > { %414 = vadd.xlane.f32.xlu1 %v413_v61 }
 0x13d   : > { %v426_v62 = vld [vmem:[#allocation3] sm:$0xff] }
 0x13e   : > { %v427_v63 = vsel %vm327_vm0, %v426_v62, 0.0 }
 0x13f   : > { %428 = vadd.xlane.f32.xlu1 %v427_v63 }
 0x1c8   : > { %v415_v0 = vpop.xlane.xlu1 %414 }
 0x1c9   : > { %v416_v1 = vrot.slane %v415_v0, 4 }
 0x1cb   : > { %v417_v2 = vadd.f32 %v416_v1, %v415_v0 }
 0x1cc   : > { %v429_v3 = vpop.xlane.xlu1 %428 }
 0x1cd   : > { %v418_v4 = vrot.slane %v417_v2, 2  ;;  %v430_v5 = vrot.slane %v429_v3, 4 }
 0x1cf   : > { %v431_v6 = vadd.f32 %v430_v5, %v429_v3  ;;  %v419_v7 = vadd.f32 %v418_v4, %v417_v2 }
 0x1d1   : > { %v432_v8 = vrot.slane %v431_v6, 2  ;;  %v420_v9 = vrot.slane %v419_v7, 1 }
 0x1d3   : > { %v433_v10 = vadd.f32 %v432_v8, %v431_v6  ;;  %v421_v11 = vadd.f32 %v420_v9, %v419_v7 }
 0x1d5   : > { %618 = vpush %v421_v11  ;;  %v434_v12 = vrot.slane %v433_v10, 1 }
 0x1d7   : > { %v435_v13 = vadd.f32 %v434_v12, %v433_v10 }
 0x1d9   : > { %620 = vpush %v435_v13 }
 0x206   : > { %s619_s25 = spop %618 }
 0x207   : > { %v423_v14 = vstv %s619_s25 }
 0x208   : > { %425 = vst.msk [vmem:[%s316_s21] sm:$0x1] %vm424_vm7, %v423_v14 }
 0x20a   : > { %s621_s6 = spop %620 }
 0x20b   : > { %v437_v15 = vstv %s621_s6 }
 0x20c   : > { %438 = vst.msk [vmem:[%s322_s27] sm:$0x1] %vm424_vm7, %v437_v15 }
 0x20d PF: > { %s22_s20 = sadd.s32 1, %s841_s20   ;;  %s1091_s15 = smov %s825_s16 }
 0x20e   : > { %p19_p4 = scmp.ge.s32.totalorder %s22_s20, 4   ;;  %s1092_s16 = smov %s829_s17 }
 0x20f   : > { %s1093_s17 = smov %s990_s5  ;;  %s1094_s18 = smov %s837_s19 }
 0x210   : > { %s1095_s19 = smov %s1097_s7  ;;  %21 = sbr.rel (!%p19_p4) target bundleno = 9 (0x9), region = 113 }
 0x217   :  { %480 = vsyncpa [#allocation5], 1 }
 0x218   :  { %482 = vsyncpa [#allocation5 + $0x1], 1 }
 0x219   :  { %483 = vsyncpa [#allocation8], 1 }
 0x21a   :  { %485 = vsyncpa [#allocation8 + $0x1], 1 }
 0x21b   :  { %486 = vsyncpa [#allocation6], 1 }
 0x21c   :  { %488 = vsyncpa [#allocation6 + $0x1], 1 }

</bundles_post_ra>
